<compile_context>
chip_gen: v6e
topology: v6e:2x2x1
jax: 0.10.0
libtpu: 0.0.40
codegen_flags: <defaults>
</compile_context>

<pallas_src>
import jax
import jax.numpy as jnp
from jax.experimental import pallas as pl
from jax.experimental.pallas import tpu as pltpu

_LANES = 128
_TARGET_BLOCK_BYTES = 4 * 1024 * 1024  # ~4 MiB per block (mem-bound sweet spot)


def _swish_kernel(beta_ref, x_ref, o_ref):
    # beta is a float32 scalar in SMEM (scalar-prefetch operand); read once.
    beta = beta_ref[0]
    x = x_ref[...]
    z = x.astype(jnp.float32) * beta
    # sigmoid's exp goes to the EUP; multiplies on the VPU. Output keeps the
    # input storage dtype (bf16 stays bf16 end-to-end on the HBM side).
    o_ref[...] = (x.astype(jnp.float32) * jax.nn.sigmoid(z)).astype(o_ref.dtype)


def _learnable_swish_impl(x, beta):
    orig_shape = x.shape
    n = x.size
    itemsize = jnp.dtype(x.dtype).itemsize

    rem = n % _LANES
    if rem != 0:
        # Rare fallback (numel not a multiple of 128): minimal pad, one copy.
        flat = jnp.pad(x.reshape(-1), (0, _LANES - rem))
    else:
        flat = x.reshape(-1)  # contiguous row-major reshape: no copy

    rows = flat.shape[0] // _LANES
    x2d = flat.reshape(rows, _LANES)  # lane-dense [rows, 128]

    # Block sizing: as big as ~4 MiB, multiple of 8 sublanes (or the full
    # extent for tiny inputs). Ragged last block handled by Pallas masking.
    bytes_per_row = _LANES * itemsize
    block_rows = min(rows, max(8, _TARGET_BLOCK_BYTES // bytes_per_row))
    if block_rows < rows:
        block_rows = (block_rows // 8) * 8  # satisfy the (8, 128) constraint
    grid = (pl.cdiv(rows, block_rows),)

    beta_smem = jnp.asarray(beta, dtype=jnp.float32).reshape(1)

    out2d = pl.pallas_call(
        _swish_kernel,
        out_shape=jax.ShapeDtypeStruct((rows, _LANES), x.dtype),
        grid_spec=pltpu.PrefetchScalarGridSpec(
            num_scalar_prefetch=1,  # beta lands in SMEM before the grid runs
            grid=grid,
            in_specs=[pl.BlockSpec((block_rows, _LANES),
                                   lambda i, beta_ref: (i, 0))],
            out_specs=pl.BlockSpec((block_rows, _LANES),
                                   lambda i, beta_ref: (i, 0)),
        ),
        compiler_params=pltpu.CompilerParams(
            dimension_semantics=("parallel",),   # megacore-shard the 1-D grid
            vmem_limit_bytes=32 * 1024 * 1024,   # 2x(in)+2x(out) 4 MiB bufs + headroom
        ),
    )(beta_smem, x2d)

    out = out2d.reshape(-1)
    if rem != 0:
        out = out[:n]
    return out.reshape(orig_shape)


# TODO(synk): pallas_call is not differentiable by default; wrap with
# jax.custom_vjp (or a pure-JAX fallback) if gradients w.r.t. x / beta are
# needed for training.
learnable_swish = jax.jit(_learnable_swish_impl)


if __name__ == "__main__":
    key = jax.random.PRNGKey(0)
    # NCHW input, consistent with typical conv-activation use of the module.
    x = jax.random.normal(key, (2, 4, 16, 16), dtype=jnp.float32)

    # Matches nn.Parameter(torch.tensor(1.0)) — kept in float32 always.
    beta = jnp.float32(1.0)

    y = jax.block_until_ready(learnable_swish(x, beta))

    # Reference check against plain JAX.
    y_ref = x * jax.nn.sigmoid(beta * x)
    assert y.shape == x.shape and y.dtype == x.dtype
    assert jnp.allclose(y, y_ref, atol=1e-6, rtol=1e-6)

    print("KERNEL_OK")
</pallas_src>

<mosaic_0001>
module attributes {stable_mosaic.version = 11 : i64} {
  func.func @_swish_kernel(%arg0: i32, %arg1: memref<1xf32, #tpu.memory_space<smem>>, %arg2: memref<16x128xf32, #tpu.memory_space<vmem>>, %arg3: memref<16x128xf32, #tpu.memory_space<vmem>>) attributes {dimension_semantics = [#tpu.dimension_semantics<parallel>], iteration_bounds = array<i64: 1>, scalar_prefetch = 1 : i64, scratch_operands = 0 : i64, tpu.core_type = #tpu.core_type<tc>, window_params = [{transform_indices = @transform_0, window_bounds = array<i64: 16, 128>}, {transform_indices = @transform_1, window_bounds = array<i64: 16, 128>}]} {
    %c0 = arith.constant 0 : index
    %0 = memref.load %arg1[%c0] : memref<1xf32, #tpu.memory_space<smem>>
    %c0_0 = arith.constant 0 : index
    %c0_1 = arith.constant 0 : index
    %1 = vector.load %arg2[%c0_0, %c0_1] : memref<16x128xf32, #tpu.memory_space<vmem>>, vector<16x128xf32>
    %2 = vector.broadcast %0 : f32 to vector<16x128xf32>
    %3 = arith.mulf %1, %2 : vector<16x128xf32>
    %4 = arith.negf %3 : vector<16x128xf32>
    %5 = math.exp %4 : vector<16x128xf32>
    %cst = arith.constant 1.000000e+00 : f32
    %6 = vector.broadcast %cst : f32 to vector<16x128xf32>
    %7 = arith.addf %6, %5 : vector<16x128xf32>
    %8 = arith.divf %6, %7 : vector<16x128xf32>
    %9 = arith.mulf %1, %8 : vector<16x128xf32>
    %c0_2 = arith.constant 0 : index
    %c0_3 = arith.constant 0 : index
    %10 = vector.load %arg3[%c0_2, %c0_3] : memref<16x128xf32, #tpu.memory_space<vmem>>, vector<16x128xf32>
    tpu.vector_store %arg3[%c0_2, %c0_3], %9 {strides = array<i32>} : memref<16x128xf32, #tpu.memory_space<vmem>>, vector<16x128xf32>,
    return
  }
  func.func @transform_0(%arg0: i32, %arg1: memref<1xf32, #tpu.memory_space<smem>>) -> (i32, i32) {
    %c0_i32 = arith.constant 0 : i32
    %c0_i32_0 = arith.constant 0 : i32
    return %arg0, %c0_i32 : i32, i32
  }
  func.func @transform_1(%arg0: i32, %arg1: memref<1xf32, #tpu.memory_space<smem>>) -> (i32, i32) {
    %c0_i32 = arith.constant 0 : i32
    %c0_i32_0 = arith.constant 0 : i32
    return %arg0, %c0_i32 : i32, i32
  }
}

</mosaic_0001>

<bundles_post_ra>
// kernel: _learnable_swish_impl.1
= control target key start
LH: loop header
LB: loop body
LE: loop exit
PB: predicated region body
PF: predicated region fallthrough
CT: control target
= control target key end

     0   :  { %s76_s0 = inlined_call_operand.<no memory space> [shape: f32[1], index: 0, kind: input, shape index: {}]   ;;  %s77_s1 = inlined_call_operand.vmem [shape: f32[16,128], index: 1, kind: input, shape index: {}]   ;;  %s78_s2 = inlined_call_operand.vmem [shape: f32[16,128], index: 2, kind: output, shape index: {}]  }
   0x1   :  { %v11_v0 = vld [vmem:[%s77_s1] sm:$0xff]  ;;  %v13_v1 = vstv %s76_s0  ;;  %v12_v2 = vld [vmem:[%s77_s1 + $0x8] sm:$0xff] }
   0x2   :  { %v14_v3 = vmul.f32 %v13_v1, %v11_v0  ;;  %v15_v4 = vmul.f32 %v13_v1, %v12_v2 }
   0x4   :  { %v36_v5 = vmul.f32 -1.442695, %v14_v3  ;;  %v37_v6 = vmul.f32 -1.442695, %v15_v4 }
   0x6   :  { %38 = vpow2.f32 %v36_v5 }
   0x7   :  { %40 = vpow2.f32 %v37_v6 }
  0x13   :  { %v39_v7 = vpop.eup %38 }
  0x14   :  { %v41_v8 = vpop.eup %40  ;;  %v22_v9 = vadd.f32 1.0, %v39_v7 }
  0x15   :  { %v23_v10 = vadd.f32 1.0, %v41_v8 }
  0x16   :  { %42 = vrcp.f32 %v22_v9 }
  0x17   :  { %44 = vrcp.f32 %v23_v10 }
  0x23   :  { %v43_v11 = vpop.eup %42 }
  0x24   :  { %v45_v12 = vpop.eup %44  ;;  %v28_v13 = vmul.f32 %v43_v11, %v11_v0 }
  0x25   :  { %v29_v14 = vmul.f32 %v45_v12, %v12_v2 }
  0x26   :  { %30 = vst [vmem:[%s78_s2] sm:$0xff] %v28_v13 }
  0x27   :  { %31 = vst [vmem:[%s78_s2 + $0x8] sm:$0xff] %v29_v14 }

</bundles_post_ra>
